<compile_context>
chip_gen: v7x
topology: tpu7x:2x2x1
jax: 0.10.0
libtpu: 0.0.40
codegen_flags: <defaults>
</compile_context>

<pallas_src>
import jax
import jax.numpy as jnp
from jax import lax
from jax.experimental import pallas as pl
from jax.experimental.pallas import tpu as pltpu

_EPS = 1e-8           # CKALoss eps
_NORM_EPS_SQ = 1e-24  # (F.normalize clamp_min 1e-12)^2

_CONTRACT_ROWS = (((0,), (0,)), ((), ()))   # dot_general: contract axis 0 of both


def _round_up(x, m):
    return ((x + m - 1) // m) * m


def _make_cka_kernel(n_rows, tile_n, needs_mask, mxu_dtype):
    """Kernel closed over Python scalars only (no captured jax arrays)."""
    inv_n = 1.0 / float(n_rows)   # Python float -> inlined literal

    def kernel(sh_ref, th_ref, out_ref,
               ss_acc, st_acc, tt_acc, ssum_acc, tsum_acc):
        pid = pl.program_id(0)

        @pl.when(pid == 0)
        def _():
            ss_acc[...] = jnp.zeros_like(ss_acc)
            st_acc[...] = jnp.zeros_like(st_acc)
            tt_acc[...] = jnp.zeros_like(tt_acc)
            ssum_acc[...] = jnp.zeros_like(ssum_acc)
            tsum_acc[...] = jnp.zeros_like(tsum_acc)

        # Upcast after the DMA (inputs stream in their native dtype).
        S = sh_ref[...].astype(jnp.float32)
        T = th_ref[...].astype(jnp.float32)

        if needs_mask:
            # Ragged last tile: zero out rows past the true row count. A zero
            # row stays zero after the clamped normalize, so it contributes
            # nothing to the Gram matrices or the column sums.
            row = lax.broadcasted_iota(jnp.int32, (tile_n, 1), 0) + pid * tile_n
            valid = row < n_rows
            S = jnp.where(valid, S, 0.0)
            T = jnp.where(valid, T, 0.0)

        # F.normalize(p=2, dim=1): x / max(||x||, 1e-12) == x * rsqrt(max(ss, 1e-24))
        s_sq = jnp.sum(S * S, axis=1, keepdims=True)
        t_sq = jnp.sum(T * T, axis=1, keepdims=True)
        S = S * lax.rsqrt(jnp.maximum(s_sq, _NORM_EPS_SQ))
        T = T * lax.rsqrt(jnp.maximum(t_sq, _NORM_EPS_SQ))

        # Column-sum accumulators (for the late-centering identity).
        ssum_acc[...] += jnp.sum(S, axis=0, keepdims=True)
        tsum_acc[...] += jnp.sum(T, axis=0, keepdims=True)

        # Gram accumulators: contract over the row axis directly (no .T).
        # Feed the MXU in `mxu_dtype` (bf16 by default) with f32 accumulation.
        Sm = S.astype(mxu_dtype)
        Tm = T.astype(mxu_dtype)
        ss_acc[...] += lax.dot_general(Sm, Sm, _CONTRACT_ROWS,
                                       preferred_element_type=jnp.float32)
        st_acc[...] += lax.dot_general(Sm, Tm, _CONTRACT_ROWS,
                                       preferred_element_type=jnp.float32)
        tt_acc[...] += lax.dot_general(Tm, Tm, _CONTRACT_ROWS,
                                       preferred_element_type=jnp.float32)

        @pl.when(pid == pl.num_programs(0) - 1)
        def _():
            cs = ssum_acc[...]          # (1, dSp) column sums of normalized S
            ct = tsum_acc[...]          # (1, dTp) column sums of normalized T
            Gss = ss_acc[...]
            Gst = st_acc[...]
            Gtt = tt_acc[...]

            cs2 = jnp.sum(cs * cs)
            ct2 = jnp.sum(ct * ct)

            # u^T G v  via a (1,d) x (d,d) matmul + elementwise reduce.
            q_ss = jnp.sum(jnp.dot(cs, Gss, preferred_element_type=jnp.float32) * cs)
            q_st = jnp.sum(jnp.dot(cs, Gst, preferred_element_type=jnp.float32) * ct)
            q_tt = jnp.sum(jnp.dot(ct, Gtt, preferred_element_type=jnp.float32) * ct)

            f_ss = jnp.sum(Gss * Gss)
            f_st = jnp.sum(Gst * Gst)
            f_tt = jnp.sum(Gtt * Gtt)

            # ||G - (1/N) u v^T||_F^2 = ||G||^2 - (2/N) u^T G v + (1/N^2)||u||^2||v||^2
            num2 = f_st - 2.0 * inv_n * q_st + inv_n * inv_n * cs2 * ct2
            d1sq = f_ss - 2.0 * inv_n * q_ss + inv_n * inv_n * cs2 * cs2
            d2sq = f_tt - 2.0 * inv_n * q_tt + inv_n * inv_n * ct2 * ct2

            num = jnp.sqrt(jnp.maximum(num2, 0.0))
            den1 = jnp.sqrt(jnp.maximum(d1sq, 0.0)) + _EPS
            den2 = jnp.sqrt(jnp.maximum(d2sq, 0.0)) + _EPS
            out_ref[0, 0] = 1.0 - num * lax.rsqrt(den1 * den2)

    return kernel


def cka_loss(SH, TH, *, tile_n=None, mxu_dtype=jnp.bfloat16):
    """Pallas implementation of CKALoss.forward.

    SH: (..., dS), TH: (..., dT) with identical product of leading dims.
    mxu_dtype: operand dtype fed to the MXU for the Gram matmuls
               (bf16 = native MXU rate; pass jnp.float32 for tighter precision).
    Returns a float32 scalar.
    """
    dS = SH.shape[-1]
    dT = TH.shape[-1]
    S2 = SH.reshape(-1, dS)
    T2 = TH.reshape(-1, dT)
    n = S2.shape[0]
    assert T2.shape[0] == n, "SH and TH must flatten to the same row count"

    # Lane-align the hidden dims only (zero columns are neutral). The N axis is
    # never padded in HBM -- the ragged last tile is masked in-kernel.
    dSp = _round_up(dS, 128)
    dTp = _round_up(dT, 128)
    if dSp != dS:
        S2 = jnp.pad(S2, ((0, 0), (0, dSp - dS)))
    if dTp != dT:
        T2 = jnp.pad(T2, ((0, 0), (0, dTp - dT)))

    isS = S2.dtype.itemsize
    isT = T2.dtype.itemsize
    mxu_dtype = jnp.dtype(mxu_dtype)
    mxu_isz = mxu_dtype.itemsize

    # Dtype-aware sublane multiple for the row tile (8 f32, 16 bf16, 32 int8).
    sub = max(8, 32 // min(isS, isT))

    # Size the row tile from the VMEM budget left after the Gram accumulators.
    acc_bytes = 4 * (dSp * dSp + dSp * dTp + dTp * dTp + dSp + dTp)
    per_row_bytes = (dSp + dTp) * (2 * max(isS, isT) + 4 + mxu_isz + 4)
    budget = 48 << 20                      # conservative across v5e/v6e/v7x
    tn_cap = max(sub, ((budget - acc_bytes) // per_row_bytes) // sub * sub)

    if tile_n is None:
        tile_n = 1024
    if n <= sub:
        tn = n                             # full-extent block (always legal)
    else:
        tn = min(int(tile_n), tn_cap, (n // sub) * sub)
        tn = max(sub, (tn // sub) * sub)

    num_tiles = pl.cdiv(n, tn)
    needs_mask = (n % tn) != 0

    # Scoped VMEM limit sized from actual usage (accumulators + double-buffered
    # input blocks + per-tile f32/mxu temporaries), clamped for v7x (64 MiB/TC).
    vmem_need = (acc_bytes
                 + 2 * tn * (dSp * isS + dTp * isT)
                 + tn * (dSp + dTp) * (4 + mxu_isz)
                 + (2 << 20))
    vmem_limit = int(min(max(vmem_need, 32 << 20), 60 << 20))

    # Advisory cost estimate for the XLA scheduler.
    flops = 2 * n * (dSp * dSp + dSp * dTp + dTp * dTp)
    bytes_accessed = n * (dSp * isS + dTp * isT) + 4
    cost = pl.CostEstimate(flops=flops, transcendentals=2 * n,
                           bytes_accessed=bytes_accessed)

    out = pl.pallas_call(
        _make_cka_kernel(n, tn, needs_mask, mxu_dtype),
        out_shape=jax.ShapeDtypeStruct((1, 1), jnp.float32),
        grid_spec=pltpu.PrefetchScalarGridSpec(
            num_scalar_prefetch=0,
            grid=(num_tiles,),
            in_specs=[
                pl.BlockSpec((tn, dSp), lambda i: (i, 0)),
                pl.BlockSpec((tn, dTp), lambda i: (i, 0)),
            ],
            out_specs=pl.BlockSpec(memory_space=pltpu.MemorySpace.SMEM),
            scratch_shapes=[
                pltpu.VMEM((dSp, dSp), jnp.float32),   # S^T S accumulator
                pltpu.VMEM((dSp, dTp), jnp.float32),   # S^T T accumulator
                pltpu.VMEM((dTp, dTp), jnp.float32),   # T^T T accumulator
                pltpu.VMEM((1, dSp), jnp.float32),     # column sums of S
                pltpu.VMEM((1, dTp), jnp.float32),     # column sums of T
            ],
        ),
        compiler_params=pltpu.CompilerParams(
            dimension_semantics=("arbitrary",),        # N axis is a reduction
            vmem_limit_bytes=vmem_limit),
        cost_estimate=cost,
    )(S2, T2)
    return out[0, 0]


def _cka_loss_ref(SH, TH):
    """Pure-JAX reference (f32) for validation."""
    dS, dT = SH.shape[-1], TH.shape[-1]
    S = SH.reshape(-1, dS).astype(jnp.float32)
    T = TH.reshape(-1, dT).astype(jnp.float32)
    S = S / jnp.maximum(jnp.linalg.norm(S, axis=1, keepdims=True), 1e-12)
    T = T / jnp.maximum(jnp.linalg.norm(T, axis=1, keepdims=True), 1e-12)
    S = S - S.mean(0, keepdims=True)
    T = T - T.mean(0, keepdims=True)
    num = jnp.linalg.norm(S.T @ T)
    den1 = jnp.linalg.norm(S.T @ S) + _EPS
    den2 = jnp.linalg.norm(T.T @ T) + _EPS
    return 1.0 - num / jnp.sqrt(den1 * den2)


if __name__ == "__main__":
    key = jax.random.PRNGKey(0)
    k1, k2, k3, k4 = jax.random.split(key, 4)

    # Student hidden states: (batch=2, seq=8, dS=32); teacher: (2, 8, dT=64).
    SH = jax.random.normal(k1, (2, 8, 32), dtype=jnp.float32)
    TH = jax.random.normal(k2, (2, 8, 64), dtype=jnp.float32)
    ref = _cka_loss_ref(SH, TH)

    # f32-MXU path, single tile: tight tolerance vs reference.
    loss = cka_loss(SH, TH, mxu_dtype=jnp.float32)
    jax.block_until_ready(loss)
    assert jnp.allclose(loss, ref, atol=1e-5, rtol=1e-5), (loss, ref)

    # Default bf16-MXU path (native MXU rate); looser tolerance.
    loss_bf_mxu = cka_loss(SH, TH)
    jax.block_until_ready(loss_bf_mxu)
    assert jnp.allclose(loss_bf_mxu, ref, atol=1e-2, rtol=1e-2), (loss_bf_mxu, ref)

    # Multi-tile + ragged last tile: N=18 rows, tile_n=8 -> 3 grid steps with an
    # in-kernel row mask (no N-axis padding / HBM copy).
    SH2 = jax.random.normal(k3, (2, 9, 32), dtype=jnp.float32)
    TH2 = jax.random.normal(k4, (2, 9, 64), dtype=jnp.float32)
    ref2 = _cka_loss_ref(SH2, TH2)
    loss2 = cka_loss(SH2, TH2, tile_n=8, mxu_dtype=jnp.float32)
    jax.block_until_ready(loss2)
    assert jnp.allclose(loss2, ref2, atol=1e-5, rtol=1e-5), (loss2, ref2)

    # Native bf16 inputs stream without a wrapper upcast (half the DMA bytes);
    # tile rounds up to the bf16 sublane multiple (16) -> 2 grid steps, ragged.
    SH_bf, TH_bf = SH2.astype(jnp.bfloat16), TH2.astype(jnp.bfloat16)
    ref_bf = _cka_loss_ref(SH_bf, TH_bf)
    loss_bf = cka_loss(SH_bf, TH_bf, tile_n=16)
    jax.block_until_ready(loss_bf)
    assert jnp.allclose(loss_bf, ref_bf, atol=1e-2, rtol=1e-2), (loss_bf, ref_bf)

    print("KERNEL_OK")
</pallas_src>

<mosaic_0001>
module attributes {stable_mosaic.version = 11 : i64} {
  func.func @kernel(%arg0: i32, %arg1: memref<16x128xf32, #tpu.memory_space<vmem>>, %arg2: memref<16x128xf32, #tpu.memory_space<vmem>>, %arg3: memref<1x1xf32, #tpu.memory_space<smem>>, %arg4: memref<128x128xf32, #tpu.memory_space<vmem>>, %arg5: memref<128x128xf32, #tpu.memory_space<vmem>>, %arg6: memref<128x128xf32, #tpu.memory_space<vmem>>, %arg7: memref<1x128xf32, #tpu.memory_space<vmem>>, %arg8: memref<1x128xf32, #tpu.memory_space<vmem>>) attributes {dimension_semantics = [#tpu.dimension_semantics<arbitrary>], iteration_bounds = array<i64: 1>, scalar_prefetch = 0 : i64, scratch_operands = 5 : i64, tpu.core_type = #tpu.core_type<tc>, window_params = [{transform_indices = @transform_0, window_bounds = array<i64: 16, 128>}, {transform_indices = @transform_1, window_bounds = array<i64: 16, 128>}, {transform_indices = @transform_2, window_bounds = array<i64: 1, 1>}]} {
    %c0_i32 = arith.constant 0 : i32
    %0 = arith.cmpi eq, %arg0, %c0_i32 : i32
    %1 = arith.extui %0 : i1 to i32
    %c0_i32_0 = arith.constant 0 : i32
    %2 = arith.cmpi ne, %1, %c0_i32_0 : i32
    scf.if %2 {
      %cst_34 = arith.constant 0.000000e+00 : f32
      %46 = vector.broadcast %cst_34 : f32 to vector<128x128xf32>
      %c0_35 = arith.constant 0 : index
      %c0_36 = arith.constant 0 : index
      %47 = vector.load %arg4[%c0_35, %c0_36] : memref<128x128xf32, #tpu.memory_space<vmem>>, vector<128x128xf32>
      tpu.vector_store %arg4[%c0_35, %c0_36], %46 {strides = array<i32>} : memref<128x128xf32, #tpu.memory_space<vmem>>, vector<128x128xf32>,
      %cst_37 = arith.constant 0.000000e+00 : f32
      %48 = vector.broadcast %cst_37 : f32 to vector<128x128xf32>
      %c0_38 = arith.constant 0 : index
      %c0_39 = arith.constant 0 : index
      %49 = vector.load %arg5[%c0_38, %c0_39] : memref<128x128xf32, #tpu.memory_space<vmem>>, vector<128x128xf32>
      tpu.vector_store %arg5[%c0_38, %c0_39], %48 {strides = array<i32>} : memref<128x128xf32, #tpu.memory_space<vmem>>, vector<128x128xf32>,
      %cst_40 = arith.constant 0.000000e+00 : f32
      %50 = vector.broadcast %cst_40 : f32 to vector<128x128xf32>
      %c0_41 = arith.constant 0 : index
      %c0_42 = arith.constant 0 : index
      %51 = vector.load %arg6[%c0_41, %c0_42] : memref<128x128xf32, #tpu.memory_space<vmem>>, vector<128x128xf32>
      tpu.vector_store %arg6[%c0_41, %c0_42], %50 {strides = array<i32>} : memref<128x128xf32, #tpu.memory_space<vmem>>, vector<128x128xf32>,
      %cst_43 = arith.constant 0.000000e+00 : f32
      %52 = vector.broadcast %cst_43 : f32 to vector<1x128xf32>
      %c0_44 = arith.constant 0 : index
      %c0_45 = arith.constant 0 : index
      %53 = vector.load %arg7[%c0_44, %c0_45] : memref<1x128xf32, #tpu.memory_space<vmem>>, vector<1x128xf32>
      tpu.vector_store %arg7[%c0_44, %c0_45], %52 {strides = array<i32>} : memref<1x128xf32, #tpu.memory_space<vmem>>, vector<1x128xf32>,
      %cst_46 = arith.constant 0.000000e+00 : f32
      %54 = vector.broadcast %cst_46 : f32 to vector<1x128xf32>
      %c0_47 = arith.constant 0 : index
      %c0_48 = arith.constant 0 : index
      %55 = vector.load %arg8[%c0_47, %c0_48] : memref<1x128xf32, #tpu.memory_space<vmem>>, vector<1x128xf32>
      tpu.vector_store %arg8[%c0_47, %c0_48], %54 {strides = array<i32>} : memref<1x128xf32, #tpu.memory_space<vmem>>, vector<1x128xf32>,
    } else {
    }
    %c0 = arith.constant 0 : index
    %c0_1 = arith.constant 0 : index
    %3 = vector.load %arg1[%c0, %c0_1] : memref<16x128xf32, #tpu.memory_space<vmem>>, vector<16x128xf32>
    %c0_2 = arith.constant 0 : index
    %c0_3 = arith.constant 0 : index
    %4 = vector.load %arg2[%c0_2, %c0_3] : memref<16x128xf32, #tpu.memory_space<vmem>>, vector<16x128xf32>
    %5 = arith.mulf %3, %3 : vector<16x128xf32>
    %cst = arith.constant dense<0.000000e+00> : vector<16xf32>
    %6 = vector.multi_reduction <add>, %5, %cst [1] : vector<16x128xf32> to vector<16xf32>
    %7 = vector.shape_cast %6 : vector<16xf32> to vector<16x1xf32>
    %8 = arith.mulf %4, %4 : vector<16x128xf32>
    %cst_4 = arith.constant dense<0.000000e+00> : vector<16xf32>
    %9 = vector.multi_reduction <add>, %8, %cst_4 [1] : vector<16x128xf32> to vector<16xf32>
    %10 = vector.shape_cast %9 : vector<16xf32> to vector<16x1xf32>
    %cst_5 = arith.constant 1.000000e-24 : f32
    %11 = vector.broadcast %cst_5 : f32 to vector<16x1xf32>
    %12 = arith.maximumf %7, %11 : vector<16x1xf32>
    %13 = math.rsqrt %12 : vector<16x1xf32>
    %14 = vector.broadcast %13 : vector<16x1xf32> to vector<16x128xf32>
    %15 = arith.mulf %3, %14 : vector<16x128xf32>
    %cst_6 = arith.constant 1.000000e-24 : f32
    %16 = vector.broadcast %cst_6 : f32 to vector<16x1xf32>
    %17 = arith.maximumf %10, %16 : vector<16x1xf32>
    %18 = math.rsqrt %17 : vector<16x1xf32>
    %19 = vector.broadcast %18 : vector<16x1xf32> to vector<16x128xf32>
    %20 = arith.mulf %4, %19 : vector<16x128xf32>
    %c0_7 = arith.constant 0 : index
    %c0_8 = arith.constant 0 : index
    %21 = vector.load %arg7[%c0_7, %c0_8] : memref<1x128xf32, #tpu.memory_space<vmem>>, vector<1x128xf32>
    %cst_9 = arith.constant dense<0.000000e+00> : vector<128xf32>
    %22 = vector.multi_reduction <add>, %15, %cst_9 [0] : vector<16x128xf32> to vector<128xf32>
    %23 = vector.shape_cast %22 : vector<128xf32> to vector<1x128xf32>
    %24 = arith.addf %21, %23 : vector<1x128xf32>
    %c0_10 = arith.constant 0 : index
    %c0_11 = arith.constant 0 : index
    %25 = vector.load %arg7[%c0_10, %c0_11] : memref<1x128xf32, #tpu.memory_space<vmem>>, vector<1x128xf32>
    tpu.vector_store %arg7[%c0_10, %c0_11], %24 {strides = array<i32>} : memref<1x128xf32, #tpu.memory_space<vmem>>, vector<1x128xf32>,
    %c0_12 = arith.constant 0 : index
    %c0_13 = arith.constant 0 : index
    %26 = vector.load %arg8[%c0_12, %c0_13] : memref<1x128xf32, #tpu.memory_space<vmem>>, vector<1x128xf32>
    %cst_14 = arith.constant dense<0.000000e+00> : vector<128xf32>
    %27 = vector.multi_reduction <add>, %20, %cst_14 [0] : vector<16x128xf32> to vector<128xf32>
    %28 = vector.shape_cast %27 : vector<128xf32> to vector<1x128xf32>
    %29 = arith.addf %26, %28 : vector<1x128xf32>
    %c0_15 = arith.constant 0 : index
    %c0_16 = arith.constant 0 : index
    %30 = vector.load %arg8[%c0_15, %c0_16] : memref<1x128xf32, #tpu.memory_space<vmem>>, vector<1x128xf32>
    tpu.vector_store %arg8[%c0_15, %c0_16], %29 {strides = array<i32>} : memref<1x128xf32, #tpu.memory_space<vmem>>, vector<1x128xf32>,
    %c0_17 = arith.constant 0 : index
    %c0_18 = arith.constant 0 : index
    %31 = vector.load %arg4[%c0_17, %c0_18] : memref<128x128xf32, #tpu.memory_space<vmem>>, vector<128x128xf32>
    %cst_19 = arith.constant dense<0.000000e+00> : vector<128x128xf32>
    %32 = tpu.matmul %15, %15, %cst_19 {dimension_numbers = #tpu.dot_dimension_numbers<[0], [0], [1], [1], [0, 1, 1, 1], [], []>} : vector<16x128xf32>, vector<16x128xf32>, vector<128x128xf32> -> vector<128x128xf32>
    %33 = arith.addf %31, %32 : vector<128x128xf32>
    %c0_20 = arith.constant 0 : index
    %c0_21 = arith.constant 0 : index
    %34 = vector.load %arg4[%c0_20, %c0_21] : memref<128x128xf32, #tpu.memory_space<vmem>>, vector<128x128xf32>
    tpu.vector_store %arg4[%c0_20, %c0_21], %33 {strides = array<i32>} : memref<128x128xf32, #tpu.memory_space<vmem>>, vector<128x128xf32>,
    %c0_22 = arith.constant 0 : index
    %c0_23 = arith.constant 0 : index
    %35 = vector.load %arg5[%c0_22, %c0_23] : memref<128x128xf32, #tpu.memory_space<vmem>>, vector<128x128xf32>
    %cst_24 = arith.constant dense<0.000000e+00> : vector<128x128xf32>
    %36 = tpu.matmul %15, %20, %cst_24 {dimension_numbers = #tpu.dot_dimension_numbers<[0], [0], [1], [1], [0, 1, 1, 1], [], []>} : vector<16x128xf32>, vector<16x128xf32>, vector<128x128xf32> -> vector<128x128xf32>
    %37 = arith.addf %35, %36 : vector<128x128xf32>
    %c0_25 = arith.constant 0 : index
    %c0_26 = arith.constant 0 : index
    %38 = vector.load %arg5[%c0_25, %c0_26] : memref<128x128xf32, #tpu.memory_space<vmem>>, vector<128x128xf32>
    tpu.vector_store %arg5[%c0_25, %c0_26], %37 {strides = array<i32>} : memref<128x128xf32, #tpu.memory_space<vmem>>, vector<128x128xf32>,
    %c0_27 = arith.constant 0 : index
    %c0_28 = arith.constant 0 : index
    %39 = vector.load %arg6[%c0_27, %c0_28] : memref<128x128xf32, #tpu.memory_space<vmem>>, vector<128x128xf32>
    %cst_29 = arith.constant dense<0.000000e+00> : vector<128x128xf32>
    %40 = tpu.matmul %20, %20, %cst_29 {dimension_numbers = #tpu.dot_dimension_numbers<[0], [0], [1], [1], [0, 1, 1, 1], [], []>} : vector<16x128xf32>, vector<16x128xf32>, vector<128x128xf32> -> vector<128x128xf32>
    %41 = arith.addf %39, %40 : vector<128x128xf32>
    %c0_30 = arith.constant 0 : index
    %c0_31 = arith.constant 0 : index
    %42 = vector.load %arg6[%c0_30, %c0_31] : memref<128x128xf32, #tpu.memory_space<vmem>>, vector<128x128xf32>
    tpu.vector_store %arg6[%c0_30, %c0_31], %41 {strides = array<i32>} : memref<128x128xf32, #tpu.memory_space<vmem>>, vector<128x128xf32>,
    %c0_i32_32 = arith.constant 0 : i32
    %43 = arith.cmpi eq, %arg0, %c0_i32_32 : i32
    %44 = arith.extui %43 : i1 to i32
    %c0_i32_33 = arith.constant 0 : i32
    %45 = arith.cmpi ne, %44, %c0_i32_33 : i32
    scf.if %45 {
      %c0_34 = arith.constant 0 : index
      %c0_35 = arith.constant 0 : index
      %46 = vector.load %arg7[%c0_34, %c0_35] : memref<1x128xf32, #tpu.memory_space<vmem>>, vector<1x128xf32>
      %c0_36 = arith.constant 0 : index
      %c0_37 = arith.constant 0 : index
      %47 = vector.load %arg8[%c0_36, %c0_37] : memref<1x128xf32, #tpu.memory_space<vmem>>, vector<1x128xf32>
      %c0_38 = arith.constant 0 : index
      %c0_39 = arith.constant 0 : index
      %48 = vector.load %arg4[%c0_38, %c0_39] : memref<128x128xf32, #tpu.memory_space<vmem>>, vector<128x128xf32>
      %c0_40 = arith.constant 0 : index
      %c0_41 = arith.constant 0 : index
      %49 = vector.load %arg5[%c0_40, %c0_41] : memref<128x128xf32, #tpu.memory_space<vmem>>, vector<128x128xf32>
      %c0_42 = arith.constant 0 : index
      %c0_43 = arith.constant 0 : index
      %50 = vector.load %arg6[%c0_42, %c0_43] : memref<128x128xf32, #tpu.memory_space<vmem>>, vector<128x128xf32>
      %51 = arith.mulf %46, %46 : vector<1x128xf32>
      %52 = vector.shape_cast %51 : vector<1x128xf32> to vector<1x1x128xf32>
      %cst_44 = arith.constant dense<0.000000e+00> : vector<1xf32>
      %53 = vector.multi_reduction <add>, %52, %cst_44 [1, 2] : vector<1x1x128xf32> to vector<1xf32>
      %54 = vector.shape_cast %53 : vector<1xf32> to vector<1x1x1xf32>
      %55 = vector.extract %54[0, 0, 0] : f32 from vector<1x1x1xf32>
      %56 = arith.mulf %47, %47 : vector<1x128xf32>
      %57 = vector.shape_cast %56 : vector<1x128xf32> to vector<1x1x128xf32>
      %cst_45 = arith.constant dense<0.000000e+00> : vector<1xf32>
      %58 = vector.multi_reduction <add>, %57, %cst_45 [1, 2] : vector<1x1x128xf32> to vector<1xf32>
      %59 = vector.shape_cast %58 : vector<1xf32> to vector<1x1x1xf32>
      %60 = vector.extract %59[0, 0, 0] : f32 from vector<1x1x1xf32>
      %cst_46 = arith.constant dense<0.000000e+00> : vector<1x128xf32>
      %61 = tpu.matmul %46, %48, %cst_46 {dimension_numbers = #tpu.dot_dimension_numbers<[1], [0], [0], [1], [0, 0, 1, 1], [], []>} : vector<1x128xf32>, vector<128x128xf32>, vector<1x128xf32> -> vector<1x128xf32>
      %62 = arith.mulf %61, %46 : vector<1x128xf32>
      %63 = vector.shape_cast %62 : vector<1x128xf32> to vector<1x1x128xf32>
      %cst_47 = arith.constant dense<0.000000e+00> : vector<1xf32>
      %64 = vector.multi_reduction <add>, %63, %cst_47 [1, 2] : vector<1x1x128xf32> to vector<1xf32>
      %65 = vector.shape_cast %64 : vector<1xf32> to vector<1x1x1xf32>
      %66 = vector.extract %65[0, 0, 0] : f32 from vector<1x1x1xf32>
      %cst_48 = arith.constant dense<0.000000e+00> : vector<1x128xf32>
      %67 = tpu.matmul %46, %49, %cst_48 {dimension_numbers = #tpu.dot_dimension_numbers<[1], [0], [0], [1], [0, 0, 1, 1], [], []>} : vector<1x128xf32>, vector<128x128xf32>, vector<1x128xf32> -> vector<1x128xf32>
      %68 = arith.mulf %67, %47 : vector<1x128xf32>
      %69 = vector.shape_cast %68 : vector<1x128xf32> to vector<1x1x128xf32>
      %cst_49 = arith.constant dense<0.000000e+00> : vector<1xf32>
      %70 = vector.multi_reduction <add>, %69, %cst_49 [1, 2] : vector<1x1x128xf32> to vector<1xf32>
      %71 = vector.shape_cast %70 : vector<1xf32> to vector<1x1x1xf32>
      %72 = vector.extract %71[0, 0, 0] : f32 from vector<1x1x1xf32>
      %cst_50 = arith.constant dense<0.000000e+00> : vector<1x128xf32>
      %73 = tpu.matmul %47, %50, %cst_50 {dimension_numbers = #tpu.dot_dimension_numbers<[1], [0], [0], [1], [0, 0, 1, 1], [], []>} : vector<1x128xf32>, vector<128x128xf32>, vector<1x128xf32> -> vector<1x128xf32>
      %74 = arith.mulf %73, %47 : vector<1x128xf32>
      %75 = vector.shape_cast %74 : vector<1x128xf32> to vector<1x1x128xf32>
      %cst_51 = arith.constant dense<0.000000e+00> : vector<1xf32>
      %76 = vector.multi_reduction <add>, %75, %cst_51 [1, 2] : vector<1x1x128xf32> to vector<1xf32>
      %77 = vector.shape_cast %76 : vector<1xf32> to vector<1x1x1xf32>
      %78 = vector.extract %77[0, 0, 0] : f32 from vector<1x1x1xf32>
      %79 = arith.mulf %48, %48 : vector<128x128xf32>
      %80 = vector.shape_cast %79 : vector<128x128xf32> to vector<1x128x128xf32>
      %cst_52 = arith.constant dense<0.000000e+00> : vector<1xf32>
      %81 = vector.multi_reduction <add>, %80, %cst_52 [1, 2] : vector<1x128x128xf32> to vector<1xf32>
      %82 = vector.shape_cast %81 : vector<1xf32> to vector<1x1x1xf32>
      %83 = vector.extract %82[0, 0, 0] : f32 from vector<1x1x1xf32>
      %84 = arith.mulf %49, %49 : vector<128x128xf32>
      %85 = vector.shape_cast %84 : vector<128x128xf32> to vector<1x128x128xf32>
      %cst_53 = arith.constant dense<0.000000e+00> : vector<1xf32>
      %86 = vector.multi_reduction <add>, %85, %cst_53 [1, 2] : vector<1x128x128xf32> to vector<1xf32>
      %87 = vector.shape_cast %86 : vector<1xf32> to vector<1x1x1xf32>
      %88 = vector.extract %87[0, 0, 0] : f32 from vector<1x1x1xf32>
      %89 = arith.mulf %50, %50 : vector<128x128xf32>
      %90 = vector.shape_cast %89 : vector<128x128xf32> to vector<1x128x128xf32>
      %cst_54 = arith.constant dense<0.000000e+00> : vector<1xf32>
      %91 = vector.multi_reduction <add>, %90, %cst_54 [1, 2] : vector<1x128x128xf32> to vector<1xf32>
      %92 = vector.shape_cast %91 : vector<1xf32> to vector<1x1x1xf32>
      %93 = vector.extract %92[0, 0, 0] : f32 from vector<1x1x1xf32>
      %cst_55 = arith.constant 1.250000e-01 : f32
      %94 = arith.mulf %cst_55, %72 : f32
      %95 = arith.subf %88, %94 : f32
      %cst_56 = arith.constant 3.906250e-03 : f32
      %96 = arith.mulf %cst_56, %55 : f32
      %97 = arith.mulf %96, %60 : f32
      %98 = arith.addf %95, %97 : f32
      %cst_57 = arith.constant 1.250000e-01 : f32
      %99 = arith.mulf %cst_57, %66 : f32
      %100 = arith.subf %83, %99 : f32
      %cst_58 = arith.constant 3.906250e-03 : f32
      %101 = arith.mulf %cst_58, %55 : f32
      %102 = arith.mulf %101, %55 : f32
      %103 = arith.addf %100, %102 : f32
      %cst_59 = arith.constant 1.250000e-01 : f32
      %104 = arith.mulf %cst_59, %78 : f32
      %105 = arith.subf %93, %104 : f32
      %cst_60 = arith.constant 3.906250e-03 : f32
      %106 = arith.mulf %cst_60, %60 : f32
      %107 = arith.mulf %106, %60 : f32
      %108 = arith.addf %105, %107 : f32
      %cst_61 = arith.constant 0.000000e+00 : f32
      %109 = arith.maximumf %98, %cst_61 : f32
      %110 = math.sqrt %109 : f32
      %cst_62 = arith.constant 0.000000e+00 : f32
      %111 = arith.maximumf %103, %cst_62 : f32
      %112 = math.sqrt %111 : f32
      %cst_63 = arith.constant 9.99999993E-9 : f32
      %113 = arith.addf %112, %cst_63 : f32
      %cst_64 = arith.constant 0.000000e+00 : f32
      %114 = arith.maximumf %108, %cst_64 : f32
      %115 = math.sqrt %114 : f32
      %cst_65 = arith.constant 9.99999993E-9 : f32
      %116 = arith.addf %115, %cst_65 : f32
      %117 = arith.mulf %113, %116 : f32
      %118 = math.rsqrt %117 : f32
      %119 = arith.mulf %110, %118 : f32
      %cst_66 = arith.constant 1.000000e+00 : f32
      %120 = arith.subf %cst_66, %119 : f32
      %c0_67 = arith.constant 0 : index
      %c0_68 = arith.constant 0 : index
      %121 = memref.load %arg3[%c0_67, %c0_68] : memref<1x1xf32, #tpu.memory_space<smem>>
      memref.store %120, %arg3[%c0_67, %c0_68] : memref<1x1xf32, #tpu.memory_space<smem>>
    } else {
    }
    return
  }
  func.func @transform_0(%arg0: i32) -> (i32, i32) {
    %c0_i32 = arith.constant 0 : i32
    %c0_i32_0 = arith.constant 0 : i32
    return %arg0, %c0_i32 : i32, i32
  }
  func.func @transform_1(%arg0: i32) -> (i32, i32) {
    %c0_i32 = arith.constant 0 : i32
    %c0_i32_0 = arith.constant 0 : i32
    return %arg0, %c0_i32 : i32, i32
  }
  func.func @transform_2(%arg0: i32) -> (i32, i32) {
    %c0_i32 = arith.constant 0 : i32
    %c0_i32_0 = arith.constant 0 : i32
    %c0_i32_1 = arith.constant 0 : i32
    return %c0_i32, %c0_i32_0 : i32, i32
  }
}

</mosaic_0001>

<bundles_post_ra>
// kernel: tpu_custom_call.1
= control target key start
LH: loop header
LB: loop body
LE: loop exit
PB: predicated region body
PF: predicated region fallthrough
CT: control target
= control target key end

     0   :  { %7 = vsyncpa [#allocation8], 0  ;;  %s2087_s0 = inlined_call_operand.hbm [shape: f32[16,128], index: 0, kind: input, shape index: {}]   ;;  %s2088_s1 = inlined_call_operand.hbm [shape: f32[16,128], index: 1, kind: input, shape index: {}]   ;;  %s2089_s2 = inlined_call_operand.hbm [shape: f32[1,1], index: 2, kind: output, shape index: {}]  }
   0x1   :  { %8 = vsyncpa [#allocation11], 0 }
   0x2   :  { %9 = vsyncpa [#allocation9], 0  ;;  %s1925_s9 = smov [#allocation7]   ;;  %s1865_s13 = scalar_lea.hbm %s2087_s0, 256 }
   0x3   :  { %s15_s10 = sshll.u32 %s1925_s9, 4  ;;  %p1866_p0 = scmp.ne.s32.totalorder %s2087_s0, %s1865_s13  ;;  %s16_s10 = int_to_ptr.vmem [resolvable:$true] %s15_s10 }
   0x4   :  { %p1869_p1 = scmp.lt.u32.totalorder %s1865_s13, %s2087_s0 }
   0x6   :  { %p1871_p2 = pnand %p1869_p1, %p1866_p0 }
   0x8   :  { %1874 = shalt.err (!%p1871_p2)
}
   0x9   :  { %s1875_s18 = scalar_lea.vmem %s16_s10, 256  ;;  %p1880_p4 = scmp.lt.s32.totalorder %s16_s10, %s16_s10 }
   0xa   :  { %p1876_p3 = scmp.ne.s32.totalorder %s16_s10, %s1875_s18  ;;  %p1881_p5 = scmp.lt.s32.totalorder %s1875_s18, %s1875_s18 }
   0xc   :  { %p1882_p6 = por %p1881_p5, %p1880_p4 }
   0xe   :  { %p1883_p7 = pnand %p1882_p6, %p1876_p3 }
  0x10   :  { %1886 = shalt.err (!%p1883_p7)
}
  0x11   :  { %s1926_s19 = smov 128   ;;  %s1927_s20 = smov 8  }
  0x12   :  { %21 = dma.hbm_to_vmem [thread:$0]  %s2087_s0, 256, %s16_s10, [#allocation8], %s1926_s19, %s1926_s19, %s1927_s20  }
  0x13   :  { %s1928_s23 = smov [#allocation10]   ;;  %s1887_s27 = scalar_lea.hbm %s2088_s1, 256 }
  0x14   :  { %s27_s24 = sshll.u32 %s1928_s23, 4  ;;  %p1888_p8 = scmp.ne.s32.totalorder %s2088_s1, %s1887_s27  ;;  %s28_s24 = int_to_ptr.vmem [resolvable:$true] %s27_s24 }
  0x15   :  { %p1891_p9 = scmp.lt.u32.totalorder %s1887_s27, %s2088_s1 }
  0x17   :  { %p1893_p10 = pnand %p1891_p9, %p1888_p8 }
  0x19   :  { %1896 = shalt.err (!%p1893_p10)
}
  0x1a   :  { %s1897_s4 = scalar_lea.vmem %s28_s24, 256  ;;  %p1902_p12 = scmp.lt.s32.totalorder %s28_s24, %s28_s24 }
  0x1b   :  { %p1898_p11 = scmp.ne.s32.totalorder %s28_s24, %s1897_s4  ;;  %p1903_p13 = scmp.lt.s32.totalorder %s1897_s4, %s1897_s4 }
  0x1d   :  { %p1904_p0 = por %p1903_p13, %p1902_p12 }
  0x1f   :  { %p1905_p1 = pnand %p1904_p0, %p1898_p11 }
  0x21   :  { %1908 = shalt.err (!%p1905_p1)
}
  0x22   :  { %33 = dma.hbm_to_vmem [thread:$0]  %s2088_s1, 256, %s28_s24, [#allocation11], %s1926_s19, %s1926_s19, %s1927_s20  }
  0x23   :  { %1919 = dma.done.wait [#allocation8], 256  }
  0x24   :  { %1920 = vsyncadd [#allocation8], 4294967040 }
  0x25   :  { %1921 = dma.done.wait [#allocation11], 256  }
  0x26   :  { %1922 = vsyncadd [#allocation11], 4294967040  ;;  %v96_v0 = vld [vmem:[#allocation10] sm:$0xff]  ;;  %v94_v1 = vld [vmem:[#allocation7] sm:$0xff]  ;;  %v1929_v8 = vmov 0.0   ;;  %vm936_vm0 = vcmask 1040384  }
  0x27   :  { %v97_v2 = vld [vmem:[#allocation10 + $0x8] sm:$0xff]  ;;  %v104_v3 = vmul.f32 %v96_v0, %v96_v0  ;;  %v98_v4 = vmul.f32 %v94_v1, %v94_v1  ;;  %v95_v5 = vld [vmem:[#allocation7 + $0x8] sm:$0xff]  ;;  %93 = vst [vmem:[#allocation6] sm:$0x1] %v1929_v8  ;;  %92 = vst [vmem:[#allocation5] sm:$0x1] %v1929_v8 }
  0x28   :  { %v105_v6 = vmul.f32 %v97_v2, %v97_v2  ;;  %v99_v7 = vmul.f32 %v95_v5, %v95_v5  ;;  %vm190_vm1 = vcmask 130048   ;;  %vm1931_vm2 = vmmov 0   ;;  %s1932_s24 = smov 0.0  }
  0x29   :  { %106 = vadd.xlane.f32.xlu1 %v104_v3  ;;  %100 = vadd.xlane.f32.xlu0 %v98_v4 }
  0x2d   :  { %108 = vadd.xlane.f32.xlu1 %v105_v6  ;;  %102 = vadd.xlane.f32.xlu0 %v99_v7 }
  0x2e   :  { %v132_v38 = vld [vmem:[#allocation6] sm:$0x1]  ;;  %v122_v41 = vld [vmem:[#allocation5] sm:$0x1] }
  0xb6   :  { %v107_v9 = vpop.xlane.xlu1 %106  ;;  %v101_v10 = vpop.xlane.xlu0 %100 }
  0xb7   :  { %v116_v11 = vmax.f32 %v107_v9, 1e-24  ;;  %v110_v12 = vmax.f32 %v101_v10, 1e-24 }
  0xb9   :  { %1849 = vrsqrt.f32 %v116_v11 }
  0xba   :  { %1851 = vrsqrt.f32 %v110_v12  ;;  %v109_v13 = vpop.xlane.xlu1 %108  ;;  %v103_v14 = vpop.xlane.xlu0 %102 }
  0xbb   :  { %v117_v15 = vmax.f32 %v109_v13, 1e-24  ;;  %v111_v16 = vmax.f32 %v103_v14, 1e-24 }
  0xbd   :  { %1853 = vrsqrt.f32 %v117_v15 }
  0xbe   :  { %1855 = vrsqrt.f32 %v111_v16 }
  0xc3   :  { %v1850_v17 = vpop.eup %1849 }
  0xc4   :  { %v1852_v18 = vpop.eup %1851  ;;  %v120_v19 = vmul.f32 %v1850_v17, %v96_v0 }
  0xc5   :  { %v114_v20 = vmul.f32 %v1852_v18, %v94_v1 }
  0xc6   :  { %625 = vxpose.xlu1.b32.start [1/2] (short) %v120_v19, 128 }
  0xc7   :  { %v1854_v21 = vpop.eup %1853  ;;  %158 = vxpose.xlu0.b32.start [1/2] (short) %v114_v20, 128 }
  0xc8   :  { %v1856_v22 = vpop.eup %1855  ;;  %v121_v23 = vmul.f32 %v1854_v21, %v97_v2 }
  0xc9   :  { %v115_v24 = vmul.f32 %v1856_v22, %v95_v5 }
  0xca   :  { %626 = vxpose.xlu1.b32.end [2/2] (short) %v121_v23, 128  ;;  %v133_v25 = vadd.f32 %v121_v23, %v120_v19  ;;  %v1736_v26 = vpack.c.bf16 %v121_v23, %v120_v19 }
  0xcb   :  { %159 = vxpose.xlu0.b32.end [2/2] (short) %v115_v24, 128  ;;  %v123_v27 = vadd.f32 %v115_v24, %v114_v20  ;;  %v1732_v28 = vpack.c.bf16 %v115_v24, %v114_v20  ;;  %v1930_v20 = vmov 0.0|0.0  }
  0xcc   :  { %v134_v29 = vrot.slane %v133_v25, 4  ;;  %1737 = vmatprep.subr.bf16.mxu1 %v1736_v26 }
  0xcd   :  { %v124_v30 = vrot.slane %v123_v27, 4  ;;  %1733 = vmatprep.subr.bf16.mxu0 %v1732_v28  ;;  %1739 = vmatpush3.bf16.msra.mxu1 %v1736_v26 }
  0xce   :  { %v135_v31 = vadd.f32 %v134_v29, %v133_v25  ;;  %1735 = vmatpush3.bf16.msra.mxu0 %v1732_v28  ;;  %1744 = vmatprep.subr.bf16.mxu1 %v1930_v20 }
  0xcf   :  { %v125_v32 = vadd.f32 %v124_v30, %v123_v27  ;;  %1741 = vmatprep.subr.bf16.mxu0 %v1736_v26 }
  0xd0   :  { %v136_v33 = vrot.slane %v135_v31, 2 }
  0xd1   :  { %v126_v34 = vrot.slane %v125_v32, 2 }
  0xd2   :  { %v137_v35 = vadd.f32 %v136_v33, %v135_v31 }
  0xd3   :  { %v127_v36 = vadd.f32 %v126_v34, %v125_v32 }
  0xd4   :  { %v138_v37 = vrot.slane %v137_v35, 1 }
  0xd5   :  { %v128_v39 = vrot.slane %v127_v36, 1 }
  0xd6   :  { %v139_v40 = vadd.f32 %v138_v37, %v137_v35 }
  0xd7   :  { %v129_v42 = vadd.f32 %v128_v39, %v127_v36 }
  0xd8   :  { %v140_v43 = vadd.f32 %v139_v40, %v132_v38 }
  0xd9   :  { %v130_v44 = vadd.f32 %v129_v42, %v122_v41 }
  0xda   :  { %141 = vst [vmem:[#allocation6] sm:$0x1] %v140_v43 }
  0xdb   :  { %131 = vst [vmem:[#allocation5] sm:$0x1] %v130_v44 }
  0xe1   :  { %v1975_v45 = vld [vmem:[#allocation6] sm:$0x1] }
  0xe2   :  { %v947_v46 = vmul.f32 %v1975_v45, %v1975_v45  ;;  %v1980_v48 = vld [vmem:[#allocation5] sm:$0x1] }
  0xe3   :  { %v935_v49 = vmul.f32 %v1980_v48, %v1980_v48 }
  0xe4   :  { %v948_v47 = vsel %vm936_vm0, %v947_v46, 0.0 }
  0xe5   :  { %v937_v50 = vsel %vm936_vm0, %v935_v49, 0.0 }
 0x129   :  { %949 = vadd.xlane.f32.xlu1 %v948_v47 }
 0x130   :  { %938 = vadd.xlane.f32.xlu0 %v937_v50 }
 0x146   :  { %v641_v52 = vpop.trf.xlu1 }
 0x147   :  { %v174_v51 = vpop.trf.xlu0 }
 0x148   :  { %1547 = vmatprep.mubr.msk.f32.mxu0 %vm190_vm1, %v174_v51  ;;  %1575 = vmatprep.mubr.msk.f32.mxu1 %vm190_vm1, %v174_v51 }
 0x14a   :  { %v642_v54 = vpop.trf.xlu1 }
 0x14b   :  { %v175_v53 = vpop.trf.xlu0 }
 0x14c   :  { %1548 = vmatmul.mubr.msk.f32.vlgmr.msra.gmra.mrb[0].mxu0 %vm190_vm1, %v175_v53  ;;  %1576 = vmatmul.mubr.msk.f32.vlgmr.msra.gmra.mrb[0].mxu1 %vm190_vm1, %v175_v53 }
 0x14d   :  { %1743 = vmatpush3.bf16.msra.mxu0 %v1736_v26 }
 0x14e   :  { %v643_v57 = vpop.trf.xlu1  ;;  %1768 = vmatprep.subr.bf16.mxu0 %v1930_v20 }
 0x14f   :  { %v176_v55 = vpop.trf.xlu0 }
 0x150   :  { %1550 = vmatprep.mubr.msk.f32.mxu0 %vm190_vm1, %v176_v55  ;;  %1578 = vmatprep.mubr.msk.f32.mxu1 %vm190_vm1, %v176_v55 }
 0x152   :  { %v644_v59 = vpop.trf.xlu1 }
 0x153   :  { %v177_v56 = vpop.trf.xlu0 }
 0x154   :  { %1551 = vmatmul.mubr.msk.f32.gmra.mrb[2].mxu0 %vm190_vm1, %v177_v56  ;;  %1579 = vmatmul.mubr.msk.f32.gmra.mrb[2].mxu1 %vm190_vm1, %v177_v56 }
 0x156   :  { %v645_v62 = vpop.trf.xlu1 }
 0x157   :  { %v178_v58 = vpop.trf.xlu0 }
 0x158   :  { %1553 = vmatprep.mubr.msk.f32.mxu0 %vm190_vm1, %v178_v58  ;;  %1581 = vmatprep.mubr.msk.f32.mxu1 %vm190_vm1, %v178_v58 }
 0x15a   :  { %v646_v0 = vpop.trf.xlu1 }
 0x15b   :  { %v179_v60 = vpop.trf.xlu0 }
 0x15c   :  { %1554 = vmatmul.mubr.msk.f32.gmra.mrb[4].mxu0 %vm190_vm1, %v179_v60  ;;  %1582 = vmatmul.mubr.msk.f32.gmra.mrb[4].mxu1 %vm190_vm1, %v179_v60 }
 0x15e   :  { %v647_v3 = vpop.trf.xlu1 }
 0x15f   :  { %v180_v61 = vpop.trf.xlu0 }
 0x160   :  { %1556 = vmatprep.mubr.msk.f32.mxu0 %vm190_vm1, %v180_v61  ;;  %1584 = vmatprep.mubr.msk.f32.mxu1 %vm190_vm1, %v180_v61 }
 0x162   :  { %v648_v5 = vpop.trf.xlu1 }
 0x163   :  { %v181_v63 = vpop.trf.xlu0 }
 0x164   :  { %1557 = vmatmul.mubr.msk.f32.gmra.mrb[6].mxu0 %vm190_vm1, %v181_v63  ;;  %1585 = vmatmul.mubr.msk.f32.gmra.mrb[6].mxu1 %vm190_vm1, %v181_v63 }
 0x166   :  { %v649_v9 = vpop.trf.xlu1 }
 0x167   :  { %v182_v1 = vpop.trf.xlu0 }
 0x168   :  { %1559 = vmatprep.mubr.msk.f32.mxu0 %vm190_vm1, %v182_v1  ;;  %1587 = vmatprep.mubr.msk.f32.mxu1 %vm190_vm1, %v182_v1 }
 0x16a   :  { %v650_v11 = vpop.trf.xlu1 }
 0x16b   :  { %v183_v2 = vpop.trf.xlu0 }
 0x16c   :  { %1560 = vmatmul.mubr.msk.f32.gmra.mrb[8].mxu0 %vm190_vm1, %v183_v2  ;;  %1588 = vmatmul.mubr.msk.f32.gmra.mrb[8].mxu1 %vm190_vm1, %v183_v2 }
 0x16e   :  { %v651_v14 = vpop.trf.xlu1 }
 0x16f   :  { %v184_v4 = vpop.trf.xlu0 }
 0x170   :  { %1562 = vmatprep.mubr.msk.f32.mxu0 %vm190_vm1, %v184_v4  ;;  %1590 = vmatprep.mubr.msk.f32.mxu1 %vm190_vm1, %v184_v4 }
 0x172   :  { %v652_v15 = vpop.trf.xlu1 }
 0x173   :  { %v185_v6 = vpop.trf.xlu0 }
 0x174   :  { %1563 = vmatmul.mubr.msk.f32.gmra.mrb[10].mxu0 %vm190_vm1, %v185_v6  ;;  %1591 = vmatmul.mubr.msk.f32.gmra.mrb[10].mxu1 %vm190_vm1, %v185_v6 }
 0x176   :  { %v653_v16 = vpop.trf.xlu1 }
 0x177   :  { %v186_v7 = vpop.trf.xlu0 }
 0x178   :  { %1565 = vmatprep.mubr.msk.f32.mxu0 %vm190_vm1, %v186_v7  ;;  %1593 = vmatprep.mubr.msk.f32.mxu1 %vm190_vm1, %v186_v7 }
 0x17a   :  { %v654_v17 = vpop.trf.xlu1 }
 0x17b   :  { %v187_v10 = vpop.trf.xlu0 }
 0x17c   :  { %1566 = vmatmul.mubr.msk.f32.gmra.mrb[12].mxu0 %vm190_vm1, %v187_v10  ;;  %1594 = vmatmul.mubr.msk.f32.gmra.mrb[12].mxu1 %vm190_vm1, %v187_v10 }
 0x17e   :  { %v655_v18 = vpop.trf.xlu1 }
 0x17f   :  { %v188_v12 = vpop.trf.xlu0 }
 0x180   :  { %1568 = vmatprep.mubr.msk.f32.mxu0 %vm190_vm1, %v188_v12  ;;  %1596 = vmatprep.mubr.msk.f32.mxu1 %vm190_vm1, %v188_v12 }
 0x182   :  { %v656_v19 = vpop.trf.xlu1 }
 0x183   :  { %v189_v13 = vpop.trf.xlu0 }
 0x184   :  { %1569 = vmatmul.mubr.msk.f32.gmra.mrb[14].mxu0 %vm190_vm1, %v189_v13  ;;  %1597 = vmatmul.mubr.msk.f32.gmra.mrb[14].mxu1 %vm190_vm1, %v189_v13 }
 0x185   :  { %1603 = vmatprep.mubr.msk.f32.mxu0 %vm190_vm1, %v641_v52  ;;  %1659 = vmatprep.mubr.msk.f32.mxu1 %vm1931_vm2, %v1929_v8 }
 0x188   :  { %1604 = vmatmul.mubr.msk.f32.vlgmr.msra.gmra.mrb[16].mxu0 %vm190_vm1, %v642_v54 }
 0x189   :  { %1606 = vmatprep.mubr.msk.f32.mxu0 %vm190_vm1, %v643_v57 }
 0x18c   :  { %1607 = vmatmul.mubr.msk.f32.gmra.mrb[18].mxu0 %vm190_vm1, %v644_v59 }
 0x18d   :  { %1609 = vmatprep.mubr.msk.f32.mxu0 %vm190_vm1, %v645_v62 }
 0x190   :  { %1610 = vmatmul.mubr.msk.f32.gmra.mrb[20].mxu0 %vm190_vm1, %v646_v0 }
 0x191   :  { %1612 = vmatprep.mubr.msk.f32.mxu0 %vm190_vm1, %v647_v3 }
 0x194   :  { %1613 = vmatmul.mubr.msk.f32.gmra.mrb[22].mxu0 %vm190_vm1, %v648_v5 }
 0x195   :  { %1615 = vmatprep.mubr.msk.f32.mxu0 %vm190_vm1, %v649_v9 }
 0x198   :  { %1616 = vmatmul.mubr.msk.f32.gmra.mrb[24].mxu0 %vm190_vm1, %v650_v11 }
 0x199   :  { %1618 = vmatprep.mubr.msk.f32.mxu0 %vm190_vm1, %v651_v14 }
 0x19c   :  { %1619 = vmatmul.mubr.msk.f32.gmra.mrb[26].mxu0 %vm190_vm1, %v652_v15 }
 0x19d   :  { %1621 = vmatprep.mubr.msk.f32.mxu0 %vm190_vm1, %v653_v16 }
 0x1a0   :  { %1622 = vmatmul.mubr.msk.f32.gmra.mrb[28].mxu0 %vm190_vm1, %v654_v17 }
 0x1a1   :  { %1624 = vmatprep.mubr.msk.f32.mxu0 %vm190_vm1, %v655_v18 }
 0x1a4   :  { %1625 = vmatmul.mubr.msk.f32.gmra.mrb[30].mxu0 %vm190_vm1, %v656_v19 }
 0x1a5   :  { %1694 = vmatprep.mubr.msk.f32.mxu0 %vm1931_vm2, %v1929_v8 }
 0x1b6   :  { %v950_v21 = vpop.xlane.xlu1 %949 }
 0x1b7   :  { %v951_v22 = vrot.slane %v950_v21, 4 }
 0x1b9   :  { %v952_v23 = vadd.f32 %v951_v22, %v950_v21 }
 0x1bb   :  { %v953_v24 = vrot.slane %v952_v23, 2 }
 0x1bd   :  { %v939_v25 = vpop.xlane.xlu0 %938  ;;  %v954_v28 = vadd.f32 %v953_v24, %v952_v23 }
 0x1be   :  { %v940_v26 = vrot.slane %v939_v25, 4 }
 0x1bf   :  { %v955_v31 = vrot.slane %v954_v28, 1 }
 0x1c0   :  { %v941_v27 = vadd.f32 %v940_v26, %v939_v25 }
 0x1c1   :  { %v956_v34 = vadd.f32 %v955_v31, %v954_v28 }
 0x1c2   :  { %v942_v29 = vrot.slane %v941_v27, 2 }
 0x1c4   :  { %v943_v30 = vadd.f32 %v942_v29, %v941_v27 }
 0x1c6   :  { %v944_v32 = vrot.slane %v943_v30, 1 }
 0x1c8   :  { %v945_v33 = vadd.f32 %v944_v32, %v943_v30 }
 0x1ca   :  { %1816 = vpush %v945_v33 }
 0x1cb   :  { %1818 = vpush %v956_v34 }
 0x1fb   :  { %s1817_s1 = spop %1816 }
 0x1fc   :  { %s1323_s6 = smul.f32 0.00390625, %s1817_s1  ;;  %s1819_s7 = spop %1818 }
 0x1fd   :  { %s1332_s8 = smul.f32 0.00390625, %s1819_s7 }
 0x1fe   :  { %s1328_s10 = smul.f32 %s1817_s1, %s1323_s6 }
 0x1ff   :  { %s1324_s11 = smul.f32 %s1819_s7, %s1323_s6 }
 0x200   :  { %s1333_s15 = smul.f32 %s1819_s7, %s1332_s8 }
 0x21f   :  { %v1549_v35 = vpop.f32.mrb[0].mxu0  ;;  %v1577_v36 = vpop.f32.mrb[0].mxu1 }
 0x220   :  { %v1202_v37 = vmul.f32 %v1549_v35, %v1549_v35  ;;  %v1242_v38 = vmul.f32 %v1577_v36, %v1577_v36  ;;  %v305_v39 = vpop.f32.mrb[1].mxu0  ;;  %v498_v40 = vpop.f32.mrb[1].mxu1 }
 0x221   :  { %v1745_v41 = vpack.c.bf16 %v1549_v35, %v305_v39  ;;  %v1201_v42 = vmul.f32 %v305_v39, %v305_v39  ;;  %v1769_v43 = vpack.c.bf16 %v1577_v36, %v498_v40  ;;  %v1241_v44 = vmul.f32 %v498_v40, %v498_v40 }
 0x223   :  { %v1217_v46 = vadd.f32 %v1202_v37, %v1201_v42  ;;  %v1257_v47 = vadd.f32 %v1242_v38, %v1241_v44  ;;  %1746 = vmatpush3.bf16.msra.mxu1 %v1745_v41  ;;  %1770 = vmatpush3.bf16.msra.mxu0 %v1769_v43 }
 0x224   :  { %1747 = vmatprep.subr.bf16.mxu1 %v1930_v20  ;;  %1771 = vmatprep.subr.bf16.mxu0 %v1930_v20 }
 0x227   :  { %v1552_v49 = vpop.f32.mrb[2].mxu0  ;;  %v1580_v50 = vpop.f32.mrb[2].mxu1 }
 0x228   :  { %v315_v51 = vpop.f32.mrb[3].mxu0  ;;  %v508_v52 = vpop.f32.mrb[3].mxu1  ;;  %v1204_v57 = vmul.f32 %v1552_v49, %v1552_v49  ;;  %v1244_v58 = vmul.f32 %v1580_v50, %v1580_v50 }
 0x229   :  { %v1748_v53 = vpack.c.bf16 %v1552_v49, %v315_v51  ;;  %v1203_v54 = vmul.f32 %v315_v51, %v315_v51  ;;  %v1772_v55 = vpack.c.bf16 %v1580_v50, %v508_v52  ;;  %v1243_v56 = vmul.f32 %v508_v52, %v508_v52 }
 0x22b   :  { %v1218_v59 = vadd.f32 %v1217_v46, %v1203_v54  ;;  %v1258_v60 = vadd.f32 %v1257_v47, %v1243_v56  ;;  %1749 = vmatpush3.bf16.msra.mxu1 %v1748_v53  ;;  %1773 = vmatpush3.bf16.msra.mxu0 %v1772_v55 }
 0x22c   :  { %1750 = vmatprep.subr.bf16.mxu1 %v1930_v20  ;;  %1774 = vmatprep.subr.bf16.mxu0 %v1930_v20 }
 0x22d   :  { %v1219_v61 = vadd.f32 %v1218_v59, %v1204_v57  ;;  %v1259_v62 = vadd.f32 %v1258_v60, %v1244_v58 }
 0x22f   :  { %v1555_v63 = vpop.f32.mrb[4].mxu0  ;;  %v1583_v0 = vpop.f32.mrb[4].mxu1 }
 0x230   :  { %v325_v1 = vpop.f32.mrb[5].mxu0  ;;  %v518_v2 = vpop.f32.mrb[5].mxu1  ;;  %v1206_v7 = vmul.f32 %v1555_v63, %v1555_v63  ;;  %v1246_v9 = vmul.f32 %v1583_v0, %v1583_v0 }
 0x231   :  { %v1751_v3 = vpack.c.bf16 %v1555_v63, %v325_v1  ;;  %v1205_v4 = vmul.f32 %v325_v1, %v325_v1  ;;  %v1775_v5 = vpack.c.bf16 %v1583_v0, %v518_v2  ;;  %v1245_v6 = vmul.f32 %v518_v2, %v518_v2 }
 0x233   :  { %v1220_v10 = vadd.f32 %v1219_v61, %v1205_v4  ;;  %v1260_v11 = vadd.f32 %v1259_v62, %v1245_v6  ;;  %1752 = vmatpush3.bf16.msra.mxu1 %v1751_v3  ;;  %1776 = vmatpush3.bf16.msra.mxu0 %v1775_v5 }
 0x234   :  { %1753 = vmatprep.subr.bf16.mxu1 %v1930_v20  ;;  %1777 = vmatprep.subr.bf16.mxu0 %v1930_v20 }
 0x235   :  { %v1221_v12 = vadd.f32 %v1220_v10, %v1206_v7  ;;  %v1261_v13 = vadd.f32 %v1260_v11, %v1246_v9 }
 0x237   :  { %v1558_v14 = vpop.f32.mrb[6].mxu0  ;;  %v1586_v15 = vpop.f32.mrb[6].mxu1 }
 0x238   :  { %v335_v16 = vpop.f32.mrb[7].mxu0  ;;  %v528_v17 = vpop.f32.mrb[7].mxu1  ;;  %v1208_v23 = vmul.f32 %v1558_v14, %v1558_v14  ;;  %v1248_v24 = vmul.f32 %v1586_v15, %v1586_v15 }
 0x239   :  { %v1754_v18 = vpack.c.bf16 %v1558_v14, %v335_v16  ;;  %v1207_v19 = vmul.f32 %v335_v16, %v335_v16  ;;  %v1778_v21 = vpack.c.bf16 %v1586_v15, %v528_v17  ;;  %v1247_v22 = vmul.f32 %v528_v17, %v528_v17 }
 0x23b   :  { %v1222_v25 = vadd.f32 %v1221_v12, %v1207_v19  ;;  %v1262_v26 = vadd.f32 %v1261_v13, %v1247_v22  ;;  %1755 = vmatpush3.bf16.msra.mxu1 %v1754_v18  ;;  %1779 = vmatpush3.bf16.msra.mxu0 %v1778_v21 }
 0x23c   :  { %1756 = vmatprep.subr.bf16.mxu1 %v1930_v20  ;;  %1780 = vmatprep.subr.bf16.mxu0 %v1930_v20 }
 0x23d   :  { %v1223_v27 = vadd.f32 %v1222_v25, %v1208_v23  ;;  %v1263_v28 = vadd.f32 %v1262_v26, %v1248_v24 }
 0x23f   :  { %v1561_v29 = vpop.f32.mrb[8].mxu0  ;;  %v1589_v30 = vpop.f32.mrb[8].mxu1 }
 0x240   :  { %v345_v31 = vpop.f32.mrb[9].mxu0  ;;  %v538_v32 = vpop.f32.mrb[9].mxu1  ;;  %v1210_v37 = vmul.f32 %v1561_v29, %v1561_v29  ;;  %v1250_v38 = vmul.f32 %v1589_v30, %v1589_v30 }
 0x241   :  { %v1757_v33 = vpack.c.bf16 %v1561_v29, %v345_v31  ;;  %v1209_v34 = vmul.f32 %v345_v31, %v345_v31  ;;  %v1781_v35 = vpack.c.bf16 %v1589_v30, %v538_v32  ;;  %v1249_v36 = vmul.f32 %v538_v32, %v538_v32 }
 0x243   :  { %v1224_v39 = vadd.f32 %v1223_v27, %v1209_v34  ;;  %v1264_v40 = vadd.f32 %v1263_v28, %v1249_v36  ;;  %1758 = vmatpush3.bf16.msra.mxu1 %v1757_v33  ;;  %1782 = vmatpush3.bf16.msra.mxu0 %v1781_v35 }
 0x244   :  { %1759 = vmatprep.subr.bf16.mxu1 %v1930_v20  ;;  %1783 = vmatprep.subr.bf16.mxu0 %v1930_v20 }
 0x245   :  { %v1225_v41 = vadd.f32 %v1224_v39, %v1210_v37  ;;  %v1265_v42 = vadd.f32 %v1264_v40, %v1250_v38 }
 0x247   :  { %v1564_v43 = vpop.f32.mrb[10].mxu0  ;;  %v1592_v44 = vpop.f32.mrb[10].mxu1 }
 0x248   :  { %v355_v46 = vpop.f32.mrb[11].mxu0  ;;  %v548_v47 = vpop.f32.mrb[11].mxu1  ;;  %v1212_v53 = vmul.f32 %v1564_v43, %v1564_v43  ;;  %v1252_v54 = vmul.f32 %v1592_v44, %v1592_v44 }
 0x249   :  { %v1760_v49 = vpack.c.bf16 %v1564_v43, %v355_v46  ;;  %v1211_v50 = vmul.f32 %v355_v46, %v355_v46  ;;  %v1784_v51 = vpack.c.bf16 %v1592_v44, %v548_v47  ;;  %v1251_v52 = vmul.f32 %v548_v47, %v548_v47 }
 0x24b   :  { %v1226_v55 = vadd.f32 %v1225_v41, %v1211_v50  ;;  %v1266_v56 = vadd.f32 %v1265_v42, %v1251_v52  ;;  %1761 = vmatpush3.bf16.msra.mxu1 %v1760_v49  ;;  %1785 = vmatpush3.bf16.msra.mxu0 %v1784_v51 }
 0x24c   :  { %1762 = vmatprep.subr.bf16.mxu1 %v1930_v20  ;;  %1786 = vmatprep.subr.bf16.mxu0 %v1930_v20 }
 0x24d   :  { %v1227_v57 = vadd.f32 %v1226_v55, %v1212_v53  ;;  %v1267_v58 = vadd.f32 %v1266_v56, %v1252_v54 }
 0x24f   :  { %v1567_v59 = vpop.f32.mrb[12].mxu0  ;;  %v1595_v60 = vpop.f32.mrb[12].mxu1 }
 0x250   :  { %v365_v61 = vpop.f32.mrb[13].mxu0  ;;  %v558_v62 = vpop.f32.mrb[13].mxu1  ;;  %v1214_v3 = vmul.f32 %v1567_v59, %v1567_v59  ;;  %v1254_v4 = vmul.f32 %v1595_v60, %v1595_v60 }
 0x251   :  { %v1763_v63 = vpack.c.bf16 %v1567_v59, %v365_v61  ;;  %v1213_v0 = vmul.f32 %v365_v61, %v365_v61  ;;  %v1787_v1 = vpack.c.bf16 %v1595_v60, %v558_v62  ;;  %v1253_v2 = vmul.f32 %v558_v62, %v558_v62 }
 0x253   :  { %v1228_v5 = vadd.f32 %v1227_v57, %v1213_v0  ;;  %v1268_v6 = vadd.f32 %v1267_v58, %v1253_v2  ;;  %1764 = vmatpush3.bf16.msra.mxu1 %v1763_v63  ;;  %1788 = vmatpush3.bf16.msra.mxu0 %v1787_v1 }
 0x254   :  { %1765 = vmatprep.subr.bf16.mxu1 %v1930_v20  ;;  %1789 = vmatprep.subr.bf16.mxu0 %v1930_v20 }
 0x255   :  { %v1229_v7 = vadd.f32 %v1228_v5, %v1214_v3  ;;  %v1269_v9 = vadd.f32 %v1268_v6, %v1254_v4 }
 0x257   :  { %v1570_v10 = vpop.f32.mrb[14].mxu0  ;;  %v1598_v11 = vpop.f32.mrb[14].mxu1 }
 0x258   :  { %v375_v12 = vpop.f32.mrb[15].mxu0  ;;  %v568_v13 = vpop.f32.mrb[15].mxu1  ;;  %v1216_v18 = vmul.f32 %v1570_v10, %v1570_v10  ;;  %v1256_v19 = vmul.f32 %v1598_v11, %v1598_v11 }
 0x259   :  { %v1766_v14 = vpack.c.bf16 %v1570_v10, %v375_v12  ;;  %v1215_v15 = vmul.f32 %v375_v12, %v375_v12  ;;  %v1790_v16 = vpack.c.bf16 %v1598_v11, %v568_v13  ;;  %v1255_v17 = vmul.f32 %v568_v13, %v568_v13 }
 0x25b   :  { %v1605_v21 = vpop.f32.mrb[16].mxu0  ;;  %1767 = vmatpush3.bf16.msra.mxu1 %v1766_v14  ;;  %1791 = vmatpush3.bf16.msra.mxu0 %v1790_v16  ;;  %v1230_v22 = vadd.f32 %v1229_v7, %v1215_v15  ;;  %v1270_v23 = vadd.f32 %v1269_v9, %v1255_v17 }
 0x25c   :  { %v1282_v24 = vmul.f32 %v1605_v21, %v1605_v21  ;;  %v771_v25 = vpop.f32.mrb[17].mxu0  ;;  %1792 = vmatprep.subr.bf16.mxu1 %v1930_v20 }
 0x25d   :  { %v1793_v26 = vpack.c.bf16 %v1605_v21, %v771_v25  ;;  %v1281_v27 = vmul.f32 %v771_v25, %v771_v25  ;;  %v1231_v28 = vadd.f32 %v1230_v22, %v1216_v18  ;;  %v2054_v29 = vadd.f32 %v1270_v23, %v1256_v19 }
 0x25e   :  { %1660 = vmatmul.mubr.f32.vlgmr.msra.gmra.mrb[16].mxu1 %v1980_v48  ;;  %1695 = vmatmul.mubr.f32.vlgmr.msra.gmra.mrb[32].mxu0 %v1980_v48 }
 0x25f   :  { %v1297_v30 = vadd.f32 %v1282_v24, %v1281_v27  ;;  %v1608_v31 = vpop.f32.mrb[18].mxu0  ;;  %1232 = vadd.xlane.f32.xlu1 %v1231_v28  ;;  %1794 = vmatpush3.bf16.msra.mxu1 %v1793_v26 }
 0x260   :  { %v781_v32 = vpop.f32.mrb[19].mxu0  ;;  %1795 = vmatprep.subr.bf16.mxu1 %v1930_v20  ;;  %1729 = vmatprep.mubr.msk.f32.mxu1 %vm1931_vm2, %v1929_v8  ;;  %v1284_v35 = vmul.f32 %v1608_v31, %v1608_v31 }
 0x261   :  { %v1796_v33 = vpack.c.bf16 %v1608_v31, %v781_v32  ;;  %v1283_v34 = vmul.f32 %v781_v32, %v781_v32 }
 0x263   :  { %v1298_v36 = vadd.f32 %v1297_v30, %v1283_v34  ;;  %v1611_v37 = vpop.f32.mrb[20].mxu0  ;;  %1797 = vmatpush3.bf16.msra.mxu1 %v1796_v33 }
 0x264   :  { %v791_v38 = vpop.f32.mrb[21].mxu0  ;;  %1798 = vmatprep.subr.bf16.mxu1 %v1930_v20  ;;  %v1286_v42 = vmul.f32 %v1611_v37, %v1611_v37 }
 0x265   :  { %v1799_v39 = vpack.c.bf16 %v1611_v37, %v791_v38  ;;  %v1285_v40 = vmul.f32 %v791_v38, %v791_v38  ;;  %v1299_v41 = vadd.f32 %v1298_v36, %v1284_v35 }
 0x267   :  { %v1300_v43 = vadd.f32 %v1299_v41, %v1285_v40  ;;  %v1614_v44 = vpop.f32.mrb[22].mxu0  ;;  %1800 = vmatpush3.bf16.msra.mxu1 %v1799_v39 }
 0x268   :  { %v801_v46 = vpop.f32.mrb[23].mxu0  ;;  %1801 = vmatprep.subr.bf16.mxu1 %v1930_v20  ;;  %v1288_v50 = vmul.f32 %v1614_v44, %v1614_v44 }
 0x269   :  { %v1802_v8 = vpack.c.bf16 %v1614_v44, %v801_v46  ;;  %v1287_v47 = vmul.f32 %v801_v46, %v801_v46  ;;  %v1301_v49 = vadd.f32 %v1300_v43, %v1286_v42 }
 0x26b   :  { %v1302_v51 = vadd.f32 %v1301_v49, %v1287_v47  ;;  %v1617_v52 = vpop.f32.mrb[24].mxu0  ;;  %1803 = vmatpush3.bf16.msra.mxu1 %v1802_v8 }
 0x26c   :  { %v811_v53 = vpop.f32.mrb[25].mxu0  ;;  %1804 = vmatprep.subr.bf16.mxu1 %v1930_v20  ;;  %v1290_v57 = vmul.f32 %v1617_v52, %v1617_v52 }
 0x26d   :  { %v1805_v54 = vpack.c.bf16 %v1617_v52, %v811_v53  ;;  %v1289_v55 = vmul.f32 %v811_v53, %v811_v53  ;;  %v1303_v56 = vadd.f32 %v1302_v51, %v1288_v50 }
 0x26f   :  { %v1304_v58 = vadd.f32 %v1303_v56, %v1289_v55  ;;  %v1620_v59 = vpop.f32.mrb[26].mxu0  ;;  %1806 = vmatpush3.bf16.msra.mxu1 %v1805_v54 }
 0x270   :  { %v821_v60 = vpop.f32.mrb[27].mxu0  ;;  %1807 = vmatprep.subr.bf16.mxu1 %v1930_v20  ;;  %v1292_v0 = vmul.f32 %v1620_v59, %v1620_v59 }
 0x271   :  { %v1808_v61 = vpack.c.bf16 %v1620_v59, %v821_v60  ;;  %v1291_v62 = vmul.f32 %v821_v60, %v821_v60  ;;  %v1305_v63 = vadd.f32 %v1304_v58, %v1290_v57 }
 0x273   :  { %v1306_v1 = vadd.f32 %v1305_v63, %v1291_v62  ;;  %v1623_v2 = vpop.f32.mrb[28].mxu0  ;;  %1809 = vmatpush3.bf16.msra.mxu1 %v1808_v61 }
 0x274   :  { %v831_v3 = vpop.f32.mrb[29].mxu0  ;;  %1810 = vmatprep.subr.bf16.mxu1 %v1930_v20  ;;  %v1294_v7 = vmul.f32 %v1623_v2, %v1623_v2 }
 0x275   :  { %v1811_v4 = vpack.c.bf16 %v1623_v2, %v831_v3  ;;  %v1293_v5 = vmul.f32 %v831_v3, %v831_v3  ;;  %v1307_v6 = vadd.f32 %v1306_v1, %v1292_v0 }
 0x277   :  { %v1308_v9 = vadd.f32 %v1307_v6, %v1293_v5  ;;  %v1626_v10 = vpop.f32.mrb[30].mxu0  ;;  %1812 = vmatpush3.bf16.msra.mxu1 %v1811_v4 }
 0x278   :  { %v841_v11 = vpop.f32.mrb[31].mxu0  ;;  %1813 = vmatprep.subr.bf16.mxu1 %v1930_v20  ;;  %v1296_v15 = vmul.f32 %v1626_v10, %v1626_v10 }
 0x279   :  { %v1814_v12 = vpack.c.bf16 %v1626_v10, %v841_v11  ;;  %v1295_v13 = vmul.f32 %v841_v11, %v841_v11  ;;  %v1309_v14 = vadd.f32 %v1308_v9, %v1294_v7 }
 0x27b   :  { %1815 = vmatpush3.bf16.msra.mxu1 %v1814_v12  ;;  %v1310_v16 = vadd.f32 %v1309_v14, %v1295_v13 }
 0x27d   :  { %v1311_v17 = vadd.f32 %v1310_v16, %v1296_v15 }
 0x27e   :  { %1730 = vmatmul.mubr.f32.vlgmr.msra.gmra.mrb[18].mxu1 %v1975_v45 }
 0x331   :  { %v1024_v18 = vpop.f32.mrb[16].mxu1  ;;  %v1105_v19 = vpop.f32.mrb[32].mxu0 }
 0x332   :  { %v1028_v21 = vmul.f32 %v1024_v18, %v1980_v48  ;;  %v1109_v22 = vmul.f32 %v1105_v19, %v1975_v45  ;;  %v1661_v23 = vpop.f32.mrb[17].mxu1  ;;  %v1696_v24 = vpop.f32.mrb[33].mxu0 }
 0x333   :  { %v1233_v48 = vpop.xlane.xlu1 %1232 }
 0x334   :  { %v1110_v25 = vsel %vm936_vm0, %v1109_v22, 0.0  ;;  %v1029_v20 = vsel %vm936_vm0, %v1028_v21, 0.0  ;;  %v1234_v44 = vrot.slane %v1233_v48, 4 }
 0x335   :  { %1111 = vadd.xlane.f32.xlu1 %v1110_v25  ;;  %1030 = vadd.xlane.f32.xlu0 %v1029_v20 }
 0x339   :  { %1312 = vadd.xlane.f32.xlu1 %v1311_v17 }
 0x351   :  { %v1186_v26 = vpop.f32.mrb[18].mxu1 }
 0x352   :  { %v1190_v27 = vmul.f32 %v1186_v26, %v1975_v45  ;;  %v1731_v28 = vpop.f32.mrb[19].mxu1 }
 0x354   :  { %v1191_v30 = vsel %vm936_vm0, %v1190_v27, 0.0 }
 0x355   :  { %1192 = vadd.xlane.f32.xlu0 %v1191_v30 }
 0x359   :  { %1272 = vadd.xlane.f32.xlu0 %v2054_v29  ;;  %v1235_v29 = vadd.f32 %v1234_v44, %v1233_v48 }
 0x35b   :  { %v1236_v47 = vrot.slane %v1235_v29, 2 }
 0x35d   :  { %v1237_v55 = vadd.f32 %v1236_v47, %v1235_v29 }
 0x35f   :  { %v1238_v61 = vrot.slane %v1237_v55, 1 }
 0x361   :  { %v1239_v2 = vadd.f32 %v1238_v61, %v1237_v55 }
 0x3c2   :  { %v1112_v31 = vpop.xlane.xlu1 %1111  ;;  %v1031_v32 = vpop.xlane.xlu0 %1030 }
 0x3c3   :  { %v1113_v33 = vrot.slane %v1112_v31, 4  ;;  %v1032_v34 = vrot.slane %v1031_v32, 4 }
 0x3c5   :  { %v1114_v35 = vadd.f32 %v1113_v33, %v1112_v31  ;;  %v1033_v36 = vadd.f32 %v1032_v34, %v1031_v32 }
 0x3c6   :  { %v1313_v46 = vpop.xlane.xlu1 %1312 }
 0x3c7   :  { %v1115_v37 = vrot.slane %v1114_v35, 2  ;;  %v1034_v38 = vrot.slane %v1033_v36, 2  ;;  %v1314_v8 = vrot.slane %v1313_v46, 4 }
 0x3c9   :  { %v1035_v39 = vadd.f32 %v1034_v38, %v1033_v36  ;;  %v1116_v40 = vadd.f32 %v1115_v37, %v1114_v35  ;;  %v1315_v49 = vadd.f32 %v1314_v8, %v1313_v46 }
 0x3cb   :  { %v1036_v41 = vrot.slane %v1035_v39, 1  ;;  %v1117_v42 = vrot.slane %v1116_v40, 1  ;;  %v1316_v53 = vrot.slane %v1315_v49, 2 }
 0x3cd   :  { %v1037_v45 = vadd.f32 %v1036_v41, %v1035_v39  ;;  %v1118_v43 = vadd.f32 %v1117_v42, %v1116_v40  ;;  %v1317_v60 = vadd.f32 %v1316_v53, %v1315_v49 }
 0x3cf   :  { %1820 = vpush %v1037_v45  ;;  %v1318_v3 = vrot.slane %v1317_v60, 1 }
 0x3d0   :  { %1822 = vpush %v1118_v43 }
 0x3d1   :  { %v1319_v6 = vadd.f32 %v1318_v3, %v1317_v60 }
 0x3e2   :  { %v1193_v50 = vpop.xlane.xlu0 %1192 }
 0x3e3   :  { %v1194_v51 = vrot.slane %v1193_v50, 4 }
 0x3e5   :  { %v1195_v52 = vadd.f32 %v1194_v51, %v1193_v50 }
 0x3e6   :  { %v1273_v54 = vpop.xlane.xlu0 %1272 }
 0x3e7   :  { %v1196_v56 = vrot.slane %v1195_v52, 2  ;;  %v1274_v57 = vrot.slane %v1273_v54, 4 }
 0x3e9   :  { %v1275_v58 = vadd.f32 %v1274_v57, %v1273_v54  ;;  %v1197_v59 = vadd.f32 %v1196_v56, %v1195_v52 }
 0x3eb   :  { %v1276_v62 = vrot.slane %v1275_v58, 2  ;;  %v1198_v63 = vrot.slane %v1197_v59, 1 }
 0x3ed   :  { %v1277_v0 = vadd.f32 %v1276_v62, %v1275_v58  ;;  %v1199_v1 = vadd.f32 %v1198_v63, %v1197_v59 }
 0x3ef   :  { %1824 = vpush %v1199_v1  ;;  %v1278_v4 = vrot.slane %v1277_v0, 1 }
 0x3f0   :  { %1826 = vpush %v1239_v2 }
 0x3f1   :  { %v1279_v5 = vadd.f32 %v1278_v4, %v1277_v0 }
 0x3f3   :  { %1828 = vpush %v1279_v5 }
 0x3f4   :  { %1830 = vpush %v1319_v6 }
 0x400   :  { %s1821_s9 = spop %1820 }
 0x401   :  { %s1823_s12 = spop %1822  ;;  %s1326_s13 = smul.f32 0.125, %s1821_s9 }
 0x402   :  { %s1321_s17 = smul.f32 0.125, %s1823_s12  ;;  %s1909_s12 = scalar_lea.hbm %s2089_s2, 16 }
 0x403   :  { %p1910_p2 = scmp.ne.s32.totalorder %s2089_s2, %s1909_s12  ;;  %p1913_p3 = scmp.lt.u32.totalorder %s1909_s12, %s2089_s2 }
 0x405   :  { %p1915_p4 = pnand %p1913_p3, %p1910_p2 }
 0x420   :  { %s1825_s14 = spop %1824 }
 0x421   :  { %s1827_s16 = spop %1826  ;;  %s1330_s19 = smul.f32 0.125, %s1825_s14 }
 0x422   :  { %s1327_s18 = ssub.f32 %s1827_s16, %s1326_s13 }
 0x424   :  { %s1329_s20 = sadd.f32 %s1328_s10, %s1327_s18  ;;  %s1829_s21 = spop %1828 }
 0x425   :  { %s1322_s22 = ssub.f32 %s1829_s21, %s1321_s17  ;;  %s1831_s23 = spop %1830 }
 0x426   :  { %s1345_s25 = smax.f32 %s1932_s24, %s1329_s20  ;;  %s1331_s26 = ssub.f32 %s1831_s23, %s1330_s19 }
 0x427   :  { %v1346_v7 = vstv %s1345_s25  ;;  %s1325_s27 = sadd.f32 %s1324_s11, %s1322_s22 }
 0x428   :  { %1857 = vrsqrt.f32 %v1346_v7  ;;  %s1334_s28 = sadd.f32 %s1333_s15, %s1331_s26  ;;  %vm1349_vm3 = vcmp.eq.f32.partialorder %v1346_v7, inf  ;;  %v1352_v16 = vand.u32 2147483648, %v1346_v7  ;;  %vm1351_vm7 = vcmp.eq.f32.partialorder %v1346_v7, 0.0 }
 0x429   :  { %s1335_s29 = smax.f32 %s1932_s24, %s1325_s27 }
 0x42a   :  { %v1336_v9 = vstv %s1335_s29  ;;  %s1356_s30 = smax.f32 %s1932_s24, %s1334_s28 }
 0x42b   :  { %1859 = vrsqrt.f32 %v1336_v9  ;;  %v1357_v10 = vstv %s1356_s30  ;;  %vm1339_vm4 = vcmp.eq.f32.partialorder %v1336_v9, inf  ;;  %v1342_v17 = vand.u32 2147483648, %v1336_v9 }
 0x42c   :  { %1861 = vrsqrt.f32 %v1357_v10  ;;  %vm1341_vm5 = vcmp.eq.f32.partialorder %v1336_v9, 0.0  ;;  %vm1360_vm6 = vcmp.eq.f32.partialorder %v1357_v10, inf  ;;  %v1363_v22 = vand.u32 2147483648, %v1357_v10 }
 0x42d   :  { %vm1362_vm8 = vcmp.eq.f32.partialorder %v1357_v10, 0.0 }
 0x432   :  { %v1858_v11 = vpop.eup %1857 }
 0x433   :  { %v1348_v12 = vmul.f32 %v1858_v11, %v1346_v7 }
 0x435   :  { %v1860_v13 = vpop.eup %1859  ;;  %v1350_v18 = vsel %vm1349_vm3, %v1346_v7, %v1348_v12 }
 0x436   :  { %v1862_v14 = vpop.eup %1861  ;;  %v1338_v15 = vmul.f32 %v1860_v13, %v1336_v9  ;;  %v1353_v25 = vsel %vm1351_vm7, %v1352_v16, %v1350_v18 }
 0x437   :  { %v1359_v19 = vmul.f32 %v1862_v14, %v1357_v10 }
 0x438   :  { %v1340_v21 = vsel %vm1339_vm4, %v1336_v9, %v1338_v15 }
 0x439   :  { %v1343_v23 = vsel %vm1341_vm5, %v1342_v17, %v1340_v21  ;;  %v1361_v24 = vsel %vm1360_vm6, %v1357_v10, %v1359_v19 }
 0x43a   :  { %1832 = vpush %v1343_v23  ;;  %v1364_v20 = vsel %vm1362_vm8, %v1363_v22, %v1361_v24 }
 0x43b   :  { %1834 = vpush %v1353_v25 }
 0x43c   :  { %1836 = vpush %v1364_v20 }
 0x46b   :  { %s1833_s3 = spop %1832 }
 0x46c   :  { %s1835_s4 = spop %1834 }
 0x46d   :  { %s1355_s0 = sadd.f32 1e-08, %s1835_s4  ;;  %s1837_s5 = spop %1836 }
 0x46e   :  { %s1366_s1 = sadd.f32 1e-08, %s1837_s5 }
 0x470   :  { %s1367_s6 = smul.f32 %s1366_s1, %s1355_s0 }
 0x472   :  { %v1368_v26 = vstv %s1367_s6 }
 0x473   :  { %1863 = vrsqrt.f32 %v1368_v26 }
 0x47d   :  { %v1864_v27 = vpop.eup %1863 }
 0x47e   :  { %1838 = vpush %v1864_v27 }
 0x4af   :  { %s1839_s7 = spop %1838 }
 0x4b0   :  { %s1371_s8 = smul.f32 %s1839_s7, %s1833_s3 }
 0x4b2   :  { %s1372_s9 = ssub.f32 1.0, %s1371_s8 }
 0x4b4   :  { %1374 = sst [smem:[#allocation12]] %s1372_s9 }
 0x4b5   :  { %1918 = shalt.err (!%p1915_p4)
}
 0x4b6   :  { %s1933_s17 = smov [#allocation12]  }
 0x4b7   :  { %1382 = dma.smem_to_hbm %s1933_s17, 16, %s2089_s2, [#allocation9]  }
 0x4b8   :  { %1923 = dma.done.wait [#allocation9], 16  }
 0x4b9   :  { %1924 = vsyncadd [#allocation9], 4294967280 }
 0x4ba   :  { %1386 = sfence }
 0x4bb   :  { %1387 = vsyncpa [#allocation8], 1 }
 0x4bc   :  { %1388 = vsyncpa [#allocation11], 1 }
 0x4bd   :  { %1389 = vsyncpa [#allocation9], 1 }

</bundles_post_ra>
